<compile_context>
chip_gen: v5e
topology: v5e:2x2
jax: 0.10.0
libtpu: 0.0.40
codegen_flags: <defaults>
</compile_context>

<pallas_src>
import functools

import jax
import jax.numpy as jnp
from jax import lax
from jax.experimental import pallas as pl
from jax.experimental.pallas import tpu as pltpu


def _round_up(x, m):
    return ((x + m - 1) // m) * m


def _sublane_multiple(dtype):
    # Native sublane packing: f32 -> 8 rows, bf16 -> 16, int8/fp8 -> 32.
    return max(8, 32 // jnp.dtype(dtype).itemsize)


def _default_num_cores():
    # v7x has 2 TensorCores per chip; v5e/v6e have 1.
    try:
        kind = jax.devices()[0].device_kind.lower()
        return 2 if "v7" in kind else 1
    except Exception:
        return 1


def _sp_distill_kernel(nkc_ref, x_ref, out_ref, gcache_ref, gacc_ref, *,
                       pairs_per_core, num_tensors, inv_bsz_sq):
    """Grid = (pair_chunk [parallel], step, k_chunk).

    Step s == 0 is a prologue: it only builds the chunk's first tensor's
    normalized Gram into gcache.  Step s >= 1 builds the Gram of tensor
    (chunk_start + s), computes the pair loss against gcache and then
    overwrites gcache (teacher of pair p is the student of pair p+1).
    """
    c = pl.program_id(0)          # pair-chunk index (megacore "parallel" axis)
    s = pl.program_id(1)          # 0 = prologue, s >= 1 = pair (chunk_start+s-1)
    k = pl.program_id(2)          # feature (K) chunk index
    nk = pl.num_programs(2)

    # Tensor processed at this step (clamped for a ragged last chunk).
    t = jnp.minimum(c * pairs_per_core + s, num_tensors - 1)
    nkc_t = nkc_ref[t]            # number of real (non-pad) K chunks of tensor t

    # Zero this core's resident output block once.
    @pl.when((s == 0) & (k == 0))
    def _():
        out_ref[...] = jnp.zeros_like(out_ref)

    # Reset the Gram accumulator at the first K chunk of every tensor.
    @pl.when(k == 0)
    def _():
        gacc_ref[...] = jnp.zeros_like(gacc_ref)

    # Accumulate this K chunk's Gram contribution.  Chunks past the tensor's
    # real feature width are skipped: their block index is clamped in the
    # index_map (no new DMA) and this guard prevents re-accumulating the
    # stale buffer.
    @pl.when(k < nkc_t)
    def _():
        f = x_ref[...]            # (bsz_pad, TK), source dtype straight to MXU
        gacc_ref[...] += lax.dot_general(
            f, f,
            dimension_numbers=(((1,), (1,)), ((), ())),   # f @ f.T, no transpose
            preferred_element_type=jnp.float32)

    # Finalize on the last K chunk: normalize, diff vs. cached student Gram,
    # carry this Gram to the next step.
    @pl.when(k == nk - 1)
    def _():
        g = gacc_ref[...]
        # F.normalize: G / max(||row||, eps)  ==  G * rsqrt(max(sumsq, eps^2)).
        sumsq = jnp.sum(g * g, axis=-1, keepdims=True)
        g_n = g * lax.rsqrt(jnp.maximum(sumsq, jnp.float32(1e-24)))  # EUP rsqrt

        @pl.when(s > 0)
        def _():
            diff = g_n - gcache_ref[...]
            loss = jnp.sum(diff * diff) * jnp.float32(inv_bsz_sq)
            p = c * pairs_per_core + s - 1          # global pair index
            row = lax.broadcasted_iota(jnp.int32, out_ref.shape, 0)
            lane = lax.broadcasted_iota(jnp.int32, out_ref.shape, 1)
            out_ref[...] = jnp.where((row == 0) & (lane == p), loss,
                                     out_ref[...])

        gcache_ref[...] = g_n


def sp_distill_forward(x_list, *, num_cores=None, feature_chunk=None):
    """Mirrors SP_Distill.forward: per-adjacent-pair similarity losses."""
    num_tensors = len(x_list)
    num_pairs = num_tensors - 1
    assert num_pairs >= 1
    bsz = int(x_list[0].shape[0])
    dtype = x_list[0].dtype
    assert all(int(x.shape[0]) == bsz for x in x_list)
    assert all(x.dtype == dtype for x in x_list)

    if num_cores is None:
        num_cores = _default_num_cores()
    num_cores = max(1, min(num_cores, num_pairs))
    pairs_per_core = (num_pairs + num_cores - 1) // num_cores
    steps_per_core = pairs_per_core + 1            # +1 prologue step

    # Dtype-aware batch padding; features padded to a common lane multiple.
    bsz_pad = _round_up(bsz, _sublane_multiple(dtype))
    d_list = [int(x.shape[1]) for x in x_list]
    d_pad = _round_up(max(d_list), 128)

    # Feature-chunk size: a multiple of 128 that divides d_pad (<= 512).
    if feature_chunk is None:
        feature_chunk = 128
        for cand in (512, 384, 256):
            if d_pad % cand == 0:
                feature_chunk = cand
                break
    tk = min(feature_chunk, d_pad)
    assert tk % 128 == 0 and d_pad % tk == 0
    nk = d_pad // tk

    # Per-tensor count of real (non-pad) K chunks, scalar-prefetched to SMEM.
    nkc = jnp.asarray([(d + tk - 1) // tk for d in d_list], dtype=jnp.int32)

    def pad(x):
        pr, pc = bsz_pad - x.shape[0], d_pad - x.shape[1]
        return x if (pr == 0 and pc == 0) else jnp.pad(x, ((0, pr), (0, pc)))

    xs = jnp.stack([pad(x) for x in x_list], axis=0)   # (N, bsz_pad, d_pad)

    out_w = _round_up(num_cores * pairs_per_core, 128)

    def x_index_map(c, s, k, nkc_ref):
        t = jnp.minimum(c * pairs_per_core + s, num_tensors - 1)
        kc = jnp.minimum(k, nkc_ref[t] - 1)          # clamp -> no DMA of pad chunks
        return (t, 0, kc)

    def out_index_map(c, s, k, nkc_ref):
        return (c, 0)                                # per-core resident row block

    # Resident footprint: 2 Gram scratches + double-buffered input chunk +
    # resident output block (+ writeback buffer).  Leave 2x margin for
    # compiler-internal scratch; cap at v7x physical VMEM.
    itemsize = jnp.dtype(dtype).itemsize
    vmem_need = (2 * bsz_pad * bsz_pad * 4
                 + 2 * bsz_pad * tk * itemsize
                 + 2 * 8 * out_w * 4)
    vmem_limit = int(min(max(2 * vmem_need, 32 * 1024 * 1024), 64 * 1024 * 1024))

    out = pl.pallas_call(
        functools.partial(_sp_distill_kernel,
                          pairs_per_core=pairs_per_core,
                          num_tensors=num_tensors,
                          inv_bsz_sq=1.0 / (bsz * bsz)),
        out_shape=jax.ShapeDtypeStruct((8 * num_cores, out_w), jnp.float32),
        grid_spec=pltpu.PrefetchScalarGridSpec(
            num_scalar_prefetch=1,
            grid=(num_cores, steps_per_core, nk),
            in_specs=[
                # One (bsz_pad, TK) feature chunk per step; leading tensor
                # axis squeezed away.
                pl.BlockSpec((pl.Squeezed(), bsz_pad, tk), x_index_map),
            ],
            out_specs=pl.BlockSpec((8, out_w), out_index_map),
            scratch_shapes=[
                pltpu.VMEM((bsz_pad, bsz_pad), jnp.float32),  # gcache (carried)
                pltpu.VMEM((bsz_pad, bsz_pad), jnp.float32),  # gacc (K accumulator)
            ],
        ),
        compiler_params=pltpu.CompilerParams(
            # Pair-chunk axis is parallel (v7x megacore, each core carries its
            # own gcache); step and K axes are sequential dependencies.
            dimension_semantics=("parallel", "arbitrary", "arbitrary"),
            vmem_limit_bytes=vmem_limit,
        ),
    )(nkc, xs)

    # Each core wrote row 0 of its (8, out_w) block on disjoint lanes; all
    # other entries are zero, so a plain sum recombines them.
    return jnp.sum(out, axis=0)[:num_pairs]


def _sp_distill_ref(x_list):
    """Pure-JAX reference (mirrors the torch code exactly)."""
    def sim_loss(f_s, f_t):
        bsz = f_s.shape[0]
        g_s = f_s @ f_s.T
        g_t = f_t @ f_t.T
        g_s = g_s / jnp.maximum(jnp.linalg.norm(g_s, axis=-1, keepdims=True), 1e-12)
        g_t = g_t / jnp.maximum(jnp.linalg.norm(g_t, axis=-1, keepdims=True), 1e-12)
        d = g_t - g_s
        return jnp.sum(d * d) / (bsz * bsz)

    return jnp.stack(
        [sim_loss(x_list[i], x_list[i + 1]) for i in range(len(x_list) - 1)])


if __name__ == "__main__":
    key = jax.random.PRNGKey(0)
    bsz = 8
    bit_list = [16, 32, 64]  # matches SP_Distill.__init__ default

    keys = jax.random.split(key, len(bit_list))
    x_list = [
        jax.random.normal(k, (bsz, bits), dtype=jnp.float32)
        for k, bits in zip(keys, bit_list)
    ]

    losses = jax.block_until_ready(sp_distill_forward(x_list))

    ref = _sp_distill_ref(x_list)
    assert losses.shape == (len(bit_list) - 1,)
    assert jnp.allclose(losses, ref, atol=1e-5, rtol=1e-5), (losses, ref)

    print("KERNEL_OK")
</pallas_src>

<mosaic_0001>
module attributes {stable_mosaic.version = 11 : i64} {
  func.func @_sp_distill_kernel(%arg0: i32, %arg1: i32, %arg2: i32, %arg3: memref<3xi32, #tpu.memory_space<smem>>, %arg4: memref<1x8x128xf32, #tpu.memory_space<vmem>>, %arg5: memref<8x128xf32, #tpu.memory_space<vmem>>, %arg6: memref<8x8xf32, #tpu.memory_space<vmem>>, %arg7: memref<8x8xf32, #tpu.memory_space<vmem>>) attributes {dimension_semantics = [#tpu.dimension_semantics<parallel>, #tpu.dimension_semantics<arbitrary>, #tpu.dimension_semantics<arbitrary>], iteration_bounds = array<i64: 1, 3, 1>, scalar_prefetch = 1 : i64, scratch_operands = 2 : i64, tpu.core_type = #tpu.core_type<tc>, window_params = [{transform_indices = @transform_0, window_bounds = array<i64: 1, 8, 128>}, {transform_indices = @transform_1, window_bounds = array<i64: 8, 128>}]} {
    %c2_i32 = arith.constant 2 : i32
    %0 = arith.muli %arg0, %c2_i32 : i32
    %1 = arith.addi %0, %arg1 : i32
    %c2_i32_0 = arith.constant 2 : i32
    %2 = arith.minsi %1, %c2_i32_0 : i32
    %3 = arith.index_cast %2 : i32 to index
    %4 = memref.load %arg3[%3] : memref<3xi32, #tpu.memory_space<smem>>
    %c0_i32 = arith.constant 0 : i32
    %5 = arith.cmpi eq, %arg1, %c0_i32 : i32
    %c0_i32_1 = arith.constant 0 : i32
    %6 = arith.cmpi eq, %arg2, %c0_i32_1 : i32
    %7 = arith.andi %5, %6 : i1
    %8 = arith.extui %7 : i1 to i32
    %c0_i32_2 = arith.constant 0 : i32
    %9 = arith.cmpi ne, %8, %c0_i32_2 : i32
    scf.if %9 {
      %cst = arith.constant 0.000000e+00 : f32
      %19 = vector.broadcast %cst : f32 to vector<8x128xf32>
      %c0 = arith.constant 0 : index
      %c0_8 = arith.constant 0 : index
      %20 = vector.load %arg5[%c0, %c0_8] : memref<8x128xf32, #tpu.memory_space<vmem>>, vector<8x128xf32>
      tpu.vector_store %arg5[%c0, %c0_8], %19 {strides = array<i32>} : memref<8x128xf32, #tpu.memory_space<vmem>>, vector<8x128xf32>,
    } else {
    }
    %c0_i32_3 = arith.constant 0 : i32
    %10 = arith.cmpi eq, %arg2, %c0_i32_3 : i32
    %11 = arith.extui %10 : i1 to i32
    %c0_i32_4 = arith.constant 0 : i32
    %12 = arith.cmpi ne, %11, %c0_i32_4 : i32
    scf.if %12 {
      %cst = arith.constant 0.000000e+00 : f32
      %19 = vector.broadcast %cst : f32 to vector<8x8xf32>
      %c0 = arith.constant 0 : index
      %c0_8 = arith.constant 0 : index
      %20 = vector.load %arg7[%c0, %c0_8] : memref<8x8xf32, #tpu.memory_space<vmem>>, vector<8x8xf32>
      tpu.vector_store %arg7[%c0, %c0_8], %19 {strides = array<i32>} : memref<8x8xf32, #tpu.memory_space<vmem>>, vector<8x8xf32>,
    } else {
    }
    %13 = arith.cmpi slt, %arg2, %4 : i32
    %14 = arith.extui %13 : i1 to i32
    %c0_i32_5 = arith.constant 0 : i32
    %15 = arith.cmpi ne, %14, %c0_i32_5 : i32
    scf.if %15 {
      %c0 = arith.constant 0 : index
      %c0_8 = arith.constant 0 : index
      %c0_9 = arith.constant 0 : index
      %19 = vector.load %arg4[%c0, %c0_8, %c0_9] : memref<1x8x128xf32, #tpu.memory_space<vmem>>, vector<1x8x128xf32>
      %20 = vector.shape_cast %19 : vector<1x8x128xf32> to vector<8x128xf32>
      %c0_10 = arith.constant 0 : index
      %c0_11 = arith.constant 0 : index
      %21 = vector.load %arg7[%c0_10, %c0_11] : memref<8x8xf32, #tpu.memory_space<vmem>>, vector<8x8xf32>
      %cst = arith.constant dense<0.000000e+00> : vector<8x8xf32>
      %22 = tpu.matmul %20, %20, %cst {dimension_numbers = #tpu.dot_dimension_numbers<[1], [1], [0], [0], [0, 0, 1, 0], [], []>} : vector<8x128xf32>, vector<8x128xf32>, vector<8x8xf32> -> vector<8x8xf32>
      %23 = arith.addf %21, %22 : vector<8x8xf32>
      %c0_12 = arith.constant 0 : index
      %c0_13 = arith.constant 0 : index
      %24 = vector.load %arg7[%c0_12, %c0_13] : memref<8x8xf32, #tpu.memory_space<vmem>>, vector<8x8xf32>
      tpu.vector_store %arg7[%c0_12, %c0_13], %23 {strides = array<i32>} : memref<8x8xf32, #tpu.memory_space<vmem>>, vector<8x8xf32>,
    } else {
    }
    %c0_i32_6 = arith.constant 0 : i32
    %16 = arith.cmpi eq, %arg2, %c0_i32_6 : i32
    %17 = arith.extui %16 : i1 to i32
    %c0_i32_7 = arith.constant 0 : i32
    %18 = arith.cmpi ne, %17, %c0_i32_7 : i32
    scf.if %18 {
      %c0 = arith.constant 0 : index
      %c0_8 = arith.constant 0 : index
      %19 = vector.load %arg7[%c0, %c0_8] : memref<8x8xf32, #tpu.memory_space<vmem>>, vector<8x8xf32>
      %20 = arith.mulf %19, %19 : vector<8x8xf32>
      %cst = arith.constant dense<0.000000e+00> : vector<8xf32>
      %21 = vector.multi_reduction <add>, %20, %cst [1] : vector<8x8xf32> to vector<8xf32>
      %22 = vector.shape_cast %21 : vector<8xf32> to vector<8x1xf32>
      %cst_9 = arith.constant 1.000000e-24 : f32
      %23 = vector.broadcast %cst_9 : f32 to vector<8x1xf32>
      %24 = arith.maximumf %22, %23 : vector<8x1xf32>
      %25 = math.rsqrt %24 : vector<8x1xf32>
      %26 = vector.broadcast %25 : vector<8x1xf32> to vector<8x8xf32>
      %27 = arith.mulf %19, %26 : vector<8x8xf32>
      %c0_i32_10 = arith.constant 0 : i32
      %28 = arith.cmpi sgt, %arg1, %c0_i32_10 : i32
      %29 = arith.extui %28 : i1 to i32
      %c0_i32_11 = arith.constant 0 : i32
      %30 = arith.cmpi ne, %29, %c0_i32_11 : i32
      scf.if %30 {
        %c0_14 = arith.constant 0 : index
        %c0_15 = arith.constant 0 : index
        %32 = vector.load %arg6[%c0_14, %c0_15] : memref<8x8xf32, #tpu.memory_space<vmem>>, vector<8x8xf32>
        %33 = arith.subf %27, %32 : vector<8x8xf32>
        %34 = arith.mulf %33, %33 : vector<8x8xf32>
        %35 = vector.shape_cast %34 : vector<8x8xf32> to vector<1x8x8xf32>
        %cst_16 = arith.constant dense<0.000000e+00> : vector<1xf32>
        %36 = vector.multi_reduction <add>, %35, %cst_16 [1, 2] : vector<1x8x8xf32> to vector<1xf32>
        %37 = vector.shape_cast %36 : vector<1xf32> to vector<1x1x1xf32>
        %38 = vector.extract %37[0, 0, 0] : f32 from vector<1x1x1xf32>
        %cst_17 = arith.constant 1.562500e-02 : f32
        %39 = arith.mulf %38, %cst_17 : f32
        %c2_i32_18 = arith.constant 2 : i32
        %40 = arith.muli %arg0, %c2_i32_18 : i32
        %41 = arith.addi %40, %arg1 : i32
        %c1_i32 = arith.constant 1 : i32
        %42 = arith.subi %41, %c1_i32 : i32
        %43 = tpu.iota {dimensions = array<i32: 0>} : vector<8x128xi32>
        %44 = tpu.iota {dimensions = array<i32: 1>} : vector<8x128xi32>
        %c0_i32_19 = arith.constant 0 : i32
        %45 = vector.broadcast %c0_i32_19 : i32 to vector<8x128xi32>
        %46 = arith.cmpi eq, %43, %45 : vector<8x128xi32>
        %47 = vector.broadcast %42 : i32 to vector<8x128xi32>
        %48 = arith.cmpi eq, %44, %47 : vector<8x128xi32>
        %49 = arith.andi %46, %48 : vector<8x128xi1>
        %c0_20 = arith.constant 0 : index
        %c0_21 = arith.constant 0 : index
        %50 = vector.load %arg5[%c0_20, %c0_21] : memref<8x128xf32, #tpu.memory_space<vmem>>, vector<8x128xf32>
        %51 = vector.broadcast %39 : f32 to vector<8x128xf32>
        %52 = arith.select %49, %51, %50 : vector<8x128xi1>, vector<8x128xf32>
        %c0_22 = arith.constant 0 : index
        %c0_23 = arith.constant 0 : index
        %53 = vector.load %arg5[%c0_22, %c0_23] : memref<8x128xf32, #tpu.memory_space<vmem>>, vector<8x128xf32>
        tpu.vector_store %arg5[%c0_22, %c0_23], %52 {strides = array<i32>} : memref<8x128xf32, #tpu.memory_space<vmem>>, vector<8x128xf32>,
      } else {
      }
      %c0_12 = arith.constant 0 : index
      %c0_13 = arith.constant 0 : index
      %31 = vector.load %arg6[%c0_12, %c0_13] : memref<8x8xf32, #tpu.memory_space<vmem>>, vector<8x8xf32>
      tpu.vector_store %arg6[%c0_12, %c0_13], %27 {strides = array<i32>} : memref<8x8xf32, #tpu.memory_space<vmem>>, vector<8x8xf32>,
    } else {
    }
    return
  }
  func.func @transform_0(%arg0: i32, %arg1: i32, %arg2: i32, %arg3: memref<3xi32, #tpu.memory_space<smem>>) -> (i32, i32, i32) {
    %c2_i32 = arith.constant 2 : i32
    %0 = arith.muli %arg0, %c2_i32 : i32
    %1 = arith.addi %0, %arg1 : i32
    %c2_i32_0 = arith.constant 2 : i32
    %2 = arith.minsi %1, %c2_i32_0 : i32
    %3 = arith.index_cast %2 : i32 to index
    %4 = memref.load %arg3[%3] : memref<3xi32, #tpu.memory_space<smem>>
    %c1_i32 = arith.constant 1 : i32
    %5 = arith.subi %4, %c1_i32 : i32
    %6 = arith.minsi %arg2, %5 : i32
    %c0_i32 = arith.constant 0 : i32
    %c0_i32_1 = arith.constant 0 : i32
    return %2, %c0_i32, %6 : i32, i32, i32
  }
  func.func @transform_1(%arg0: i32, %arg1: i32, %arg2: i32, %arg3: memref<3xi32, #tpu.memory_space<smem>>) -> (i32, i32) {
    %c0_i32 = arith.constant 0 : i32
    %c0_i32_0 = arith.constant 0 : i32
    return %arg0, %c0_i32 : i32, i32
  }
}

</mosaic_0001>

<bundles_post_ra>
// kernel: tpu_custom_call.1
= control target key start
LH: loop header
LB: loop body
LE: loop exit
PB: predicated region body
PF: predicated region fallthrough
CT: control target
= control target key end

     0   :  { %s589_s12 = smov [#allocation5]   ;;  %s748_s0 = inlined_call_operand.hbm [shape: s32[3], index: 0, kind: input, shape index: {}]   ;;  %s749_s1 = inlined_call_operand.hbm [shape: f32[3,8,128], index: 1, kind: input, shape index: {}]   ;;  %s750_s2 = inlined_call_operand.hbm [shape: f32[8,128], index: 2, kind: output, shape index: {}]  }
   0x1   :  { %s8_s11 = sshll.u32 %s748_s0, 4  ;;  %s9_s11 = int_to_ptr.hbm [resolvable:$true] %s8_s11 }
   0x2   :  { %11 = dma.hbm_to_smem %s9_s11, 16, %s589_s12, [#allocation4] }
   0x3   :  { %555 = dma.done.wait [#allocation4], 16 }
   0x4   :  { %556 = vsyncadd [#allocation4], 4294967280 }
   0x5   :  { %14 = sfence }
   0x6   :  { %15 = vsyncpa [#allocation7], 0 }
   0x7   :  { %17 = vsyncpa [#allocation7 + $0x1], 0 }
   0x8   :  { %18 = vsyncpa [#allocation8], 0  ;;  %s611_s13 = smov 0   ;;  %s613_s14 = smov 0  }
   0x9   :  { %s615_s15 = smov 0   ;;  %s617_s16 = smov 0  }
   0xa   :  { %s619_s17 = smov 0   ;;  %s621_s0 = smov 0  }
   0xb LB: > { %s39_s18 = sadd.s32 1, %s583_s17  ;;  %p49_p1 = scmp.lt.s32.totalorder %s583_s17, 2  ;;  %s587_s0 = sphi %s621_s0, %s24_s0   ;;  %s583_s17 = sphi %s619_s17, %s759_s17   ;;  %s579_s16 = sphi %s617_s16, %s758_s16   ;;  %s575_s15 = sphi %s615_s15, %s757_s15   ;;  %s571_s14 = sphi %s613_s14, %s756_s14   ;;  %s567_s13 = sphi %s611_s13, %s755_s13  }
   0xc   : > { %p41_p0 = scmp.ge.s32.totalorder %s39_s18, 3  ;;  %s365_s20 = sadd.s32 4294967295, %s587_s0  }
   0xd   : > { %s644_s19 = scalar_select %p49_p1, %s583_s17, 2 }
   0xe   : > { %s761_s18 = smov (%p41_p0, %s39_s18), 0  ;;  %p81_p3 = scmp.ne.s32.totalorder %s571_s14, %s567_s13 }
   0xf   : > { %p57_p2 = scmp.lt.s32.totalorder %s761_s18, 2  ;;  %s51_s21 = sld [smem:[#allocation5 + %s644_s19]] }
  0x10   : > { %p75_p4 = scmp.ne.s32.totalorder %s575_s15, %s571_s14  ;;  %p82_p5 = scmp.eq.s32.totalorder %s365_s20, 0 }
  0x11   : > { %s58_s22 = scalar_select %p57_p2, %s761_s18, 2 }
  0x12   : > { %p76_p6 = scmp.eq.s32.totalorder %s587_s0, 0  ;;  %p656_p7 = por %p82_p5, %p81_p3 }
  0x13   : > { %s59_s23 = sld [smem:[#allocation5 + %s58_s22]]  ;;  %s68_s26 = sadd.s32 1, %s575_s15 }
  0x14   : > { %p661_p9 = por %p76_p6, %p75_p4  ;;  %p404_p10 = scmp.lt.s32.totalorder %s587_s0, 3 }
  0x15   : > { %s366_s25 = sadd.s32 4294967295, %s51_s21  ;;  %s63_s29 = ssub.s32 %s644_s19, %s58_s22 }
  0x16   : > { %p367_p8 = scmp.gt.s32.totalorder %s366_s25, 0  ;;  %p671_p12 = pnand %p404_p10, %p661_p9 }
  0x17   : > { %s390_s3 = scalar_select %p661_p9, [#allocation5], [#allocation10] }
  0x18   : > { %s763_s25 = smov (%p367_p8, %s366_s25), 0  ;;  %p376_p13 = scmp.ge.s32.totalorder %s587_s0, 1 }
  0x19   : > { %s368_s28 = sadd.s32 4294967295, %s59_s23  ;;  %p157_p1 = scmp.lt.s32.totalorder %s587_s0, 4 }
  0x1a   : > { %p369_p11 = scmp.gt.s32.totalorder %s368_s28, 0  ;;  %s767_s3 = smov (!%p404_p10, %s390_s3), [#allocation11] }
  0x1b   : > { %s391_s4 = scalar_select %p661_p9, %s644_s19, 0 }
  0x1c   : > { %s765_s28 = smov (%p369_p11, %s368_s28), 0  ;;  %p689_p2 = pnand %p376_p13, %p157_p1 }
  0x1d   : > { %s64_s5 = ssub.s32 %s763_s25, %s765_s28  ;;  %s769_s4 = smov (!%p404_p10, %s391_s4), 0 }
  0x1e   : > { %s65_s6 = sor.u32 %s64_s5, %s63_s29  ;;  %s140_s9 = sld [smem:[%s767_s3 + %s769_s4]] }
  0x1f   : > { %p66_p0 = scmp.eq.s32.totalorder %s65_s6, 0  ;;  %s131_s10 = sand.u32 1, %s575_s15  }
  0x20   : > { %s372_s11 = sshll.u32 %s131_s10, 3  ;;  %s132_s29 = scalar_lea.sflag [#allocation7], %s131_s10 }
  0x21   : > { %s685_s7 = scalar_select %p66_p0, %s575_s15, %s68_s26  }
  0x22   : > { %s135_s13 = scalar_lea.vmem [#allocation6], %s372_s11  ;;  %p477_p5 = pneg %p671_p12 }
  0x23   : > { %s152_s21 = sshll.u32 %s135_s13, 4  ;;  %s153_s21 = int_to_ptr.vmem [resolvable:$true] %s152_s21 }
  0x24   : > { %s373_s12 = sadd.s32 4294967295, %s140_s9 }
  0x25   : > { %p374_p3 = scmp.gt.s32.totalorder %s373_s12, 0 }
  0x27   : > { %s771_s12 = smov (%p374_p3, %s373_s12), 0 }
  0x28   : > { %s146_s22 = sadd.s32 %s771_s12, %s644_s19  ;;  %s480_s19 = scalar_lea.hbm %s749_s1, 24 }
  0x29   : > { %s375_s23 = sshll.u32 %s146_s22, 3 }
  0x2a   : > { %s148_s27 = scalar_lea.hbm %s749_s1, %s375_s23 }
  0x2b   : > { %s150_s28 = sshll.u32 %s148_s27, 4  ;;  %s151_s28 = int_to_ptr.hbm [resolvable:$true] %s150_s28 }
  0x2c   : > { %s473_s5 = sshra.s32 %s151_s28, 4  ;;  %s474_s5 = int_to_ptr.hbm [resolvable:$true] %s473_s5 }
  0x2d   : > { %s475_s3 = scalar_lea.hbm %s474_s5, 8  ;;  %p481_p9 = scmp.lt.s32.totalorder %s474_s5, %s749_s1 }
  0x2e   : > { %p476_p4 = scmp.ne.s32.totalorder %s474_s5, %s475_s3  ;;  %p482_p10 = scmp.lt.s32.totalorder %s480_s19, %s475_s3 }
  0x30   : > { %p478_p6 = pnand %p477_p5, %p476_p4  ;;  %p483_p11 = por %p482_p10, %p481_p9 }
  0x32   : > { %p479_p8 = pneg %p478_p6 }
  0x34   : > { %p484_p13 = pnand %p483_p11, %p479_p8 }
  0x36   : > { %487 = shalt.err (!%p484_p13)
}
  0x37   : > { %403 = dma.hbm_to_vmem [thread:$0]  (!%p671_p12), %s151_s28, 128, %s153_s21, %s132_s29  }
  0x38   : > { %161 = sbr.rel (%p689_p2) target bundleno = 554 (0x22a), region = 24  ;;  %s163_s10 = sand.u32 (!%p689_p2), 1, %s571_s14  }
  0x39   : > { %s377_s12 = sshll.u32 (!%p689_p2), %s163_s10, 3  ;;  %s164_s13 = scalar_lea.sflag (!%p689_p2), [#allocation7], %s163_s10 }
  0x3a   : > { %s167_s22 = scalar_lea.vmem (!%p689_p2), [#allocation6], %s377_s12 }
  0x3d   : > { %558 = dma.done.wait (%p656_p7), %s164_s13, 128  }
  0x3e   : > { %560 = vsyncadd (%p656_p7), %s164_s13, 4294967168  ;;  %p192_p0 = scmp.lt.s32.totalorder %s579_s16, 2  ;;  %p195_p1 = scmp.eq.s32.totalorder %s579_s16, 0 }
  0x3f   : > { %v590_v0 = vmov (%p195_p1), 0.0  }
  0x40   : > { %s193_s30 = scalar_select %p192_p0, %s579_s16, 2  ;;  %201 = vst [vmem:[#allocation9] sm:$0xff] (%p195_p1), %v590_v0 }
  0x41   : > { %200 = sbr.rel (!%p195_p1) target bundleno = 70 (0x46), region = 32 }
  0x42   : > { %s194_s21 = sld [smem:[#allocation5 + %s193_s30]] }
  0x46 PF: > { %vm205_vm0 = vcmask 64512   ;;  %v591_v1 = vmov 0.0  }
  0x47   : > { %206 = vst.msk [vmem:[#allocation3] sm:$0xff] %vm205_vm0, %v591_v1 }
  0x48   : > { %p380_p12 = scmp.le.s32.totalorder %s194_s21, 0 }
  0x4a   : > { %210 = sbr.rel (%p380_p12) target bundleno = 212 (0xd4), region = 40 }
  0x4f   : > { %v211_v2 = vld [vmem:[%s167_s22] sm:$0xff]  ;;  %v212_v3 = vld [vmem:[#allocation3] sm:$0xff] }
  0x50   : > { %228 = vmatpush.xpose.msra.mxu0 %v211_v2 }
  0x53   : > { %229 = vmatmul.f32.vlgmr.msra.gmra.mxu0 %v211_v2 }
  0xd0   : > { %v230_v4 = vpop.f32.mrf.mxu0 }
  0xd1   : > { %v233_v5 = vadd.f32 %v230_v4, %v212_v3 }
  0xd3   : > { %235 = vst.msk [vmem:[#allocation3] sm:$0xff] %vm205_vm0, %v233_v5 }
  0xd4 PF: > { %p381_p7 = scmp.le.s32.totalorder %s579_s16, 0 }
  0xd5   : > { %s382_s24 = sadd.s32 (!%p381_p7), 4294967295, %s579_s16 }
  0xda   : > { %v239_v6 = vld [vmem:[#allocation3] sm:$0xff] }
  0xdb   : > { %v240_v7 = vmul.f32 %v239_v6, %v239_v6 }
  0xdd   : > { %v242_v8 = vsel %vm205_vm0, %v240_v7, 0.0 }
  0xde   : > { %243 = vadd.xlane.f32.xlu0 %v242_v8 }
 0x151   : > { %v244_v9 = vpop.xlane.xlu0 %243 }
 0x152   : > { %v245_v10 = vmax.f32 %v244_v9, 1e-24 }
 0x154   : > { %459 = vrsqrt.f32 %v245_v10  ;;  %vm252_vm2 = vweird.f32 %v245_v10 }
 0x15a   : > { %v460_v11 = vpop.eup %459 }
 0x15b   : > { %v247_v12 = vmul.f32 %v460_v11, %v245_v10  ;;  %vm253_vm1 = vweird.f32 %v460_v11 }
 0x15c   : > { %vm254_vm3 = vmor %vm252_vm2, %vm253_vm1 }
 0x15d   : > { %v248_v13 = vmul.f32 %v460_v11, %v247_v12 }
 0x15f   : > { %v249_v14 = vmul.f32 0.5, %v248_v13 }
 0x161   : > { %v250_v15 = vsub.f32 1.5, %v249_v14 }
 0x162   : > { %260 = sbr.rel (%p381_p7) target bundleno = 548 (0x224), region = 48 }
 0x163   : > { %v251_v16 = vmul.f32 %v460_v11, %v250_v15 }
 0x165   : > { %v255_v17 = vsel %vm254_vm3, %v460_v11, %v251_v16 }
 0x166   : > { %v256_v18 = vmul.f32 %v255_v17, %v239_v6 }
 0x167   : > { %v261_v19 = vld [vmem:[#allocation2] sm:$0xff]  ;;  %v276_v30 = vlaneseq  ;;  %v281_v33 = vstv %s382_s24 }
 0x168   : > { %v262_v20 = vsub.f32 %v256_v18, %v261_v19  ;;  %v284_v34 = vld [vmem:[#allocation9] sm:$0xff] }
 0x169   : > { %v277_v31 = vshrl.u32 %v276_v30, 7  ;;  %v279_v32 = vand.u32 127, %v276_v30 }
 0x16a   : > { %v263_v21 = vmul.f32 %v262_v20, %v262_v20 }
 0x16b   : > { %vm280_vm4 = vcmp.eq.s32.totalorder %v277_v31, 0  ;;  %vm282_vm5 = vcmp.eq.s32.totalorder %v279_v32, %v281_v33 }
 0x16c   : > { %v264_v22 = vsel %vm205_vm0, %v263_v21, 0.0  ;;  %vm283_vm6 = vmand %vm280_vm4, %vm282_vm5 }
 0x16d   : > { %265 = vadd.xlane.f32.xlu0 %v264_v22 }
 0x1e0   : > { %v266_v23 = vpop.xlane.xlu0 %265 }
 0x1e1   : > { %v267_v24 = vrot.slane %v266_v23, 4 }
 0x1e3   : > { %v268_v25 = vadd.f32 %v267_v24, %v266_v23 }
 0x1e5   : > { %v269_v26 = vrot.slane %v268_v25, 2 }
 0x1e7   : > { %v270_v27 = vadd.f32 %v269_v26, %v268_v25 }
 0x1e9   : > { %v271_v28 = vrot.slane %v270_v27, 1 }
 0x1eb   : > { %v272_v29 = vadd.f32 %v271_v28, %v270_v27 }
 0x1ed   : > { %388 = vpush %v272_v29 }
 0x21e   : > { %s389_s8 = spop %388 }
 0x21f   : > { %s274_s23 = smul.f32 0.015625, %s389_s8 }
 0x221   : > { %v285_v35 = vstv %s274_s23 }
 0x222   : > { %v286_v36 = vsel %vm283_vm6, %v285_v35, %v284_v34 }
 0x223   : > { %287 = vst [vmem:[#allocation9] sm:$0xff] %v286_v36 }
 0x224 PF: > { %288 = vst.msk [vmem:[#allocation2] sm:$0xff] %vm205_vm0, %v256_v18  ;;  %p405_p2 = scmp.eq.s32.totalorder %s365_s20, 2  ;;  %s299_s26 = sshll.u32 %s750_s2, 4  ;;  %s300_s26 = int_to_ptr.hbm [resolvable:$true] %s299_s26 }
 0x225   : > { %s592_s27 = smov [#allocation9]  }
 0x226   : > { %s297_s28 = sshll.u32 %s592_s27, 4  ;;  %s298_s28 = int_to_ptr.vmem [resolvable:$true] %s297_s28 }
 0x227   : > { %395 = dma.vmem_to_hbm [thread:$0]  (%p405_p2), %s298_s28, 128, %s300_s26, [#allocation8]  }
 0x228   : > { %562 = dma.done.wait (%p405_p2), [#allocation8], 128  }
 0x229   : > { %564 = vsyncadd (%p405_p2), [#allocation8], 4294967168 }
 0x22a PF: > { %s24_s0 = sadd.s32 1, %s587_s0   ;;  %s755_s13 = smov %s571_s14 }
 0x22b   : > { %p21_p3 = scmp.ge.s32.totalorder %s24_s0, 5   ;;  %s756_s14 = smov %s575_s15 }
 0x22c   : > { %s757_s15 = smov %s685_s7  ;;  %s758_s16 = smov %s583_s17 }
 0x22d   : > { %s759_s17 = smov %s761_s18  ;;  %23 = sbr.rel (!%p21_p3) target bundleno = 11 (0xb), region = 82 }
 0x232   :  { %313 = vsyncpa [#allocation7], 1 }
 0x233   :  { %315 = vsyncpa [#allocation7 + $0x1], 1 }
 0x234   :  { %316 = vsyncpa [#allocation8], 1 }
 0x235   :  { %318 = vsyncpa [#allocation8 + $0x1], 1 }

</bundles_post_ra>
